<compile_context>
chip_gen: v5e
topology: v5e:2x2
jax: 0.10.0
libtpu: 0.0.40
codegen_flags: <defaults>
</compile_context>

<pallas_src>
import math
import jax
import jax.numpy as jnp
from jax.experimental import pallas as pl
from jax.experimental.pallas import tpu as pltpu

_GELU_C = math.sqrt(2.0 / math.pi)


def _ffn_kernel(x_ref, w1_ref, b1_ref, w2_ref, b2_ref, o_ref, acc_ref):
    # x_ref : (RT, dm)  x.dtype (cast to bf16 in-kernel)   w1_ref: (dm, FT) bf16
    # b1_ref: (1, FT) f32    w2_ref: (FT, dm) bf16          b2_ref: (1, dm) f32
    # o_ref : (RT, dm) out dtype                            acc_ref: (RT, dm) f32 scratch
    j = pl.program_id(1)

    @pl.when(j == 0)
    def _():
        acc_ref[...] = jnp.zeros_like(acc_ref)

    # Cast x to the MXU operand dtype on the VPU (avoids a wrapper-side HBM pass).
    x = x_ref[...].astype(w1_ref.dtype)

    # w_1(x) slice: bf16 operands -> f32 accumulation on the MXU, bias added in f32.
    h = jnp.dot(x, w1_ref[...], preferred_element_type=jnp.float32) + b1_ref[...]

    # GELU (tanh approximation, BERT-style) in f32; h*h computed once, constants folded.
    h2 = h * h
    g = 0.5 * h * (1.0 + jnp.tanh(_GELU_C * h * (1.0 + 0.044715 * h2)))

    # Dropout: module has p=0.1, but the inference forward is identity.
    # TODO(synk): training-mode dropout (pltpu.prng_seed/prng_random_bits per tile)
    # is not implemented.

    # Partial second matmul over this d_ff slice, accumulated in f32.
    acc_ref[...] += jnp.dot(g.astype(w2_ref.dtype), w2_ref[...],
                            preferred_element_type=jnp.float32)

    @pl.when(j == pl.num_programs(1) - 1)
    def _():
        o_ref[...] = (acc_ref[...] + b2_ref[...]).astype(o_ref.dtype)


def _round_up(x, m):
    return (x + m - 1) // m * m


def _vmem_budget_bytes():
    """Per-generation scoped-VMEM budget: 7/8 of physical capacity
    (v7x 64 MiB -> 56 MiB; v5e/v6e 128 MiB -> 112 MiB)."""
    try:
        cap = int(pltpu.get_tpu_info().vmem_capacity_bytes)
    except Exception:       # interpret / unknown chip: assume the smallest (v7x)
        cap = 64 * 1024 * 1024
    return (cap * 7) // 8


def _choose_tiles(d_model, d_ff, vmem_budget, *, x_bytes=4, out_bytes=4, param_bytes=2):
    """Pick (row_tile, ff_tile) so that resident weight tiles, double-buffered x/out
    tiles, the f32 accumulator and the f32 h/g intermediates fit the VMEM budget."""
    big = vmem_budget >= 96 * 1024 * 1024           # 128-MiB chips (v5e/v6e)
    row_tile = 512 if big else 256                  # v7x stays at 256 (review)
    ff_tile = min(2048, _round_up(d_ff, 128))

    def fits(rt, ft):
        n_ff = pl.cdiv(_round_up(d_ff, ft), ft)
        wbuf = 1 if n_ff == 1 else 2                # invariant weights single-buffered
        weights = wbuf * (2 * d_model * ft * param_bytes + ft * 4 + d_model * 4)
        xio = 2 * rt * d_model * (x_bytes + out_bytes)   # double-buffered x/out tiles
        acc = rt * d_model * 4
        interm = 2 * rt * ft * 4                    # f32 h and g live values
        return weights + xio + acc + interm <= vmem_budget

    while not fits(row_tile, ff_tile) and ff_tile > 128:
        ff_tile = _round_up(ff_tile // 2, 128)
    while not fits(row_tile, ff_tile) and row_tile > 64:
        row_tile //= 2
    return row_tile, ff_tile


def make_positionwise_feed_forward(w1, b1, w2, b2, *, row_tile=None, ff_tile=None,
                                   param_dtype=jnp.bfloat16, out_dtype=None):
    """Build a fused FFN forward: y = GELU_tanh(x @ w1 + b1) @ w2 + b2.

    w1: [d_model, d_ff] (transpose of nn.Linear(d_model, d_ff).weight), b1: [d_ff],
    w2: [d_ff, d_model], b2: [d_model].  Parameter prep (bf16 cast + d_ff zero padding,
    which is mathematically exact: zero weight + zero bias -> GELU(0)=0 -> zero
    contribution) happens ONCE here, outside the per-call hot path."""
    d_model, d_ff = w1.shape
    assert w2.shape == (d_ff, d_model)

    vmem_limit = _vmem_budget_bytes()
    auto_rt, auto_ft = _choose_tiles(d_model, d_ff, vmem_limit,
                                     param_bytes=jnp.dtype(param_dtype).itemsize)
    row_tile = auto_rt if row_tile is None else max(8, _round_up(row_tile, 8))
    ff_tile = auto_ft if ff_tile is None else max(128, _round_up(ff_tile, 128))

    dff_p = _round_up(d_ff, ff_tile)
    n_ff = dff_p // ff_tile

    # One-time parameter preparation (store params in bf16, d_ff zero-padded).
    w1_p = w1.astype(param_dtype)
    w2_p = w2.astype(param_dtype)
    if dff_p != d_ff:
        w1_p = jnp.pad(w1_p, ((0, 0), (0, dff_p - d_ff)))
        w2_p = jnp.pad(w2_p, ((0, dff_p - d_ff), (0, 0)))
    b1_p = jnp.pad(b1.astype(jnp.float32), (0, dff_p - d_ff)).reshape(1, dff_p)
    b2_p = b2.astype(jnp.float32).reshape(1, d_model)

    def forward(x):
        odt = x.dtype if out_dtype is None else out_dtype
        lead = x.shape[:-1]
        rows = 1
        for s in lead:
            rows *= s
        x2d = x.reshape(rows, d_model)          # no dtype cast / row pad in the wrapper

        rt = min(row_tile, _round_up(rows, 8))  # multiple of 8 sublanes
        n_row = pl.cdiv(rows, rt)               # ragged last tile masked by Pallas

        cost = pl.CostEstimate(
            flops=4 * rows * d_model * dff_p,
            transcendentals=rows * dff_p,
            bytes_accessed=(rows * d_model * (x2d.dtype.itemsize + jnp.dtype(odt).itemsize)
                            + (1 if n_ff == 1 else n_row)
                            * 2 * d_model * dff_p * jnp.dtype(param_dtype).itemsize
                            + (dff_p + d_model) * 4))

        def call(single_buffer_invariants):
            def wspec(shape, imap, invariant):
                if single_buffer_invariants and invariant:
                    return pl.BlockSpec(shape, imap, pipeline_mode=pl.Buffered(1))
                return pl.BlockSpec(shape, imap)

            return pl.pallas_call(
                _ffn_kernel,
                out_shape=jax.ShapeDtypeStruct((rows, d_model), odt),
                grid=(n_row, n_ff),
                in_specs=[
                    pl.BlockSpec((rt, d_model), lambda i, j: (i, 0)),           # x tile
                    wspec((d_model, ff_tile), lambda i, j: (0, j), n_ff == 1),  # w1 slice
                    wspec((1, ff_tile), lambda i, j: (0, j), n_ff == 1),        # b1 slice
                    wspec((ff_tile, d_model), lambda i, j: (j, 0), n_ff == 1),  # w2 slice
                    wspec((1, d_model), lambda i, j: (0, 0), True),             # b2
                ],
                out_specs=pl.BlockSpec((rt, d_model), lambda i, j: (i, 0)),
                scratch_shapes=[pltpu.VMEM((rt, d_model), jnp.float32)],
                compiler_params=pltpu.CompilerParams(
                    dimension_semantics=("parallel", "arbitrary"),   # rows shard on v7x TCs
                    vmem_limit_bytes=vmem_limit),
                cost_estimate=cost,
            )(x2d, w1_p, b1_p, w2_p, b2_p)

        try:
            out2d = call(True)
        except Exception:
            # Fallback if this Pallas build rejects pl.Buffered(1): default double
            # buffering (costs VMEM only, not correctness).
            out2d = call(False)

        return out2d.reshape(*lead, d_model)

    return forward


if __name__ == "__main__":
    # Small shapes consistent with the module: d_model=128, d_ff=256, batch=2, seq=8.
    batch, seq, d_model, d_ff = 2, 8, 128, 256

    key = jax.random.PRNGKey(0)
    kx, kw1, kb1, kw2, kb2 = jax.random.split(key, 5)

    x = jax.random.normal(kx, (batch, seq, d_model), dtype=jnp.float32)

    # nn.Linear(d_model, d_ff).weight is [d_ff, d_model]; we store the transpose so the
    # kernel computes x @ w1 directly (same math as x @ weight.T).
    bound1 = 1.0 / math.sqrt(d_model)
    w1 = jax.random.uniform(kw1, (d_model, d_ff), minval=-bound1, maxval=bound1,
                            dtype=jnp.float32)
    b1 = jax.random.uniform(kb1, (d_ff,), minval=-bound1, maxval=bound1,
                            dtype=jnp.float32)

    bound2 = 1.0 / math.sqrt(d_ff)
    w2 = jax.random.uniform(kw2, (d_ff, d_model), minval=-bound2, maxval=bound2,
                            dtype=jnp.float32)
    b2 = jax.random.uniform(kb2, (d_model,), minval=-bound2, maxval=bound2,
                            dtype=jnp.float32)

    ffn = make_positionwise_feed_forward(w1, b1, w2, b2)
    out = jax.block_until_ready(ffn(x))

    # Pure-JAX reference with the SAME numerics (bf16 MXU operands, f32 accumulation,
    # f32 bias/GELU, tanh-approx GELU) so tolerances stay tight.
    xb = x.reshape(-1, d_model).astype(jnp.bfloat16)
    h_ref = jnp.dot(xb, w1.astype(jnp.bfloat16), preferred_element_type=jnp.float32) + b1
    g_ref = 0.5 * h_ref * (1.0 + jnp.tanh(_GELU_C * (h_ref + 0.044715 * h_ref ** 3)))
    ref = (jnp.dot(g_ref.astype(jnp.bfloat16), w2.astype(jnp.bfloat16),
                   preferred_element_type=jnp.float32) + b2)
    ref = ref.reshape(batch, seq, d_model)

    assert out.shape == (batch, seq, d_model) and out.dtype == x.dtype
    assert jnp.allclose(out, ref, atol=5e-3, rtol=5e-3), (
        "mismatch vs reference: max abs diff = "
        f"{float(jnp.max(jnp.abs(out - ref)))}")

    print("KERNEL_OK")
</pallas_src>

<mosaic_0001>
module attributes {stable_mosaic.version = 11 : i64} {
  func.func @_ffn_kernel(%arg0: i32, %arg1: i32, %arg2: memref<16x128xf32, #tpu.memory_space<vmem>>, %arg3: memref<128x256xbf16, #tpu.memory_space<vmem>>, %arg4: memref<1x256xf32, #tpu.memory_space<vmem>>, %arg5: memref<256x128xbf16, #tpu.memory_space<vmem>>, %arg6: memref<1x128xf32, #tpu.memory_space<vmem>>, %arg7: memref<16x128xf32, #tpu.memory_space<vmem>>, %arg8: memref<16x128xf32, #tpu.memory_space<vmem>>) attributes {dimension_semantics = [#tpu.dimension_semantics<parallel>, #tpu.dimension_semantics<arbitrary>], iteration_bounds = array<i64: 1, 1>, scalar_prefetch = 0 : i64, scratch_operands = 1 : i64, tpu.core_type = #tpu.core_type<tc>, window_params = [{transform_indices = @transform_0, window_bounds = array<i64: 16, 128>}, {pipeline_mode = #tpu.pipeline_mode<synchronous>, transform_indices = @transform_1, window_bounds = array<i64: 128, 256>}, {pipeline_mode = #tpu.pipeline_mode<synchronous>, transform_indices = @transform_2, window_bounds = array<i64: 1, 256>}, {pipeline_mode = #tpu.pipeline_mode<synchronous>, transform_indices = @transform_3, window_bounds = array<i64: 256, 128>}, {pipeline_mode = #tpu.pipeline_mode<synchronous>, transform_indices = @transform_4, window_bounds = array<i64: 1, 128>}, {transform_indices = @transform_5, window_bounds = array<i64: 16, 128>}]} {
    %c0_i32 = arith.constant 0 : i32
    %0 = arith.cmpi eq, %arg1, %c0_i32 : i32
    %1 = arith.extui %0 : i1 to i32
    %c0_i32_0 = arith.constant 0 : i32
    %2 = arith.cmpi ne, %1, %c0_i32_0 : i32
    scf.if %2 {
      %cst_20 = arith.constant 0.000000e+00 : f32
      %33 = vector.broadcast %cst_20 : f32 to vector<16x128xf32>
      %c0_21 = arith.constant 0 : index
      %c0_22 = arith.constant 0 : index
      %34 = vector.load %arg8[%c0_21, %c0_22] : memref<16x128xf32, #tpu.memory_space<vmem>>, vector<16x128xf32>
      tpu.vector_store %arg8[%c0_21, %c0_22], %33 {strides = array<i32>} : memref<16x128xf32, #tpu.memory_space<vmem>>, vector<16x128xf32>,
    } else {
    }
    %c0 = arith.constant 0 : index
    %c0_1 = arith.constant 0 : index
    %3 = vector.load %arg2[%c0, %c0_1] : memref<16x128xf32, #tpu.memory_space<vmem>>, vector<16x128xf32>
    %4 = arith.truncf %3 : vector<16x128xf32> to vector<16x128xbf16>
    %c0_2 = arith.constant 0 : index
    %c0_3 = arith.constant 0 : index
    %5 = vector.load %arg3[%c0_2, %c0_3] : memref<128x256xbf16, #tpu.memory_space<vmem>>, vector<128x256xbf16>
    %cst = arith.constant dense<0.000000e+00> : vector<16x256xf32>
    %6 = tpu.matmul %4, %5, %cst {dimension_numbers = #tpu.dot_dimension_numbers<[1], [0], [0], [1], [0, 0, 1, 1], [], []>} : vector<16x128xbf16>, vector<128x256xbf16>, vector<16x256xf32> -> vector<16x256xf32>
    %c0_4 = arith.constant 0 : index
    %c0_5 = arith.constant 0 : index
    %7 = vector.load %arg4[%c0_4, %c0_5] : memref<1x256xf32, #tpu.memory_space<vmem>>, vector<1x256xf32>
    %8 = vector.broadcast %7 : vector<1x256xf32> to vector<16x256xf32>
    %9 = arith.addf %6, %8 : vector<16x256xf32>
    %10 = arith.mulf %9, %9 : vector<16x256xf32>
    %cst_6 = arith.constant 5.000000e-01 : f32
    %11 = vector.broadcast %cst_6 : f32 to vector<16x256xf32>
    %12 = arith.mulf %11, %9 : vector<16x256xf32>
    %cst_7 = arith.constant 0.797884583 : f32
    %13 = vector.broadcast %cst_7 : f32 to vector<16x256xf32>
    %14 = arith.mulf %13, %9 : vector<16x256xf32>
    %cst_8 = arith.constant 4.471500e-02 : f32
    %15 = vector.broadcast %cst_8 : f32 to vector<16x256xf32>
    %16 = arith.mulf %15, %10 : vector<16x256xf32>
    %cst_9 = arith.constant 1.000000e+00 : f32
    %17 = vector.broadcast %cst_9 : f32 to vector<16x256xf32>
    %18 = arith.addf %17, %16 : vector<16x256xf32>
    %19 = arith.mulf %14, %18 : vector<16x256xf32>
    %20 = math.tanh %19 : vector<16x256xf32>
    %cst_10 = arith.constant 1.000000e+00 : f32
    %21 = vector.broadcast %cst_10 : f32 to vector<16x256xf32>
    %22 = arith.addf %21, %20 : vector<16x256xf32>
    %23 = arith.mulf %12, %22 : vector<16x256xf32>
    %c0_11 = arith.constant 0 : index
    %c0_12 = arith.constant 0 : index
    %24 = vector.load %arg8[%c0_11, %c0_12] : memref<16x128xf32, #tpu.memory_space<vmem>>, vector<16x128xf32>
    %25 = arith.truncf %23 : vector<16x256xf32> to vector<16x256xbf16>
    %c0_13 = arith.constant 0 : index
    %c0_14 = arith.constant 0 : index
    %26 = vector.load %arg5[%c0_13, %c0_14] : memref<256x128xbf16, #tpu.memory_space<vmem>>, vector<256x128xbf16>
    %cst_15 = arith.constant dense<0.000000e+00> : vector<16x128xf32>
    %27 = tpu.matmul %25, %26, %cst_15 {dimension_numbers = #tpu.dot_dimension_numbers<[1], [0], [0], [1], [0, 0, 1, 1], [], []>} : vector<16x256xbf16>, vector<256x128xbf16>, vector<16x128xf32> -> vector<16x128xf32>
    %28 = arith.addf %24, %27 : vector<16x128xf32>
    %c0_16 = arith.constant 0 : index
    %c0_17 = arith.constant 0 : index
    %29 = vector.load %arg8[%c0_16, %c0_17] : memref<16x128xf32, #tpu.memory_space<vmem>>, vector<16x128xf32>
    tpu.vector_store %arg8[%c0_16, %c0_17], %28 {strides = array<i32>} : memref<16x128xf32, #tpu.memory_space<vmem>>, vector<16x128xf32>,
    %c0_i32_18 = arith.constant 0 : i32
    %30 = arith.cmpi eq, %arg1, %c0_i32_18 : i32
    %31 = arith.extui %30 : i1 to i32
    %c0_i32_19 = arith.constant 0 : i32
    %32 = arith.cmpi ne, %31, %c0_i32_19 : i32
    scf.if %32 {
      %c0_20 = arith.constant 0 : index
      %c0_21 = arith.constant 0 : index
      %33 = vector.load %arg8[%c0_20, %c0_21] : memref<16x128xf32, #tpu.memory_space<vmem>>, vector<16x128xf32>
      %c0_22 = arith.constant 0 : index
      %c0_23 = arith.constant 0 : index
      %34 = vector.load %arg6[%c0_22, %c0_23] : memref<1x128xf32, #tpu.memory_space<vmem>>, vector<1x128xf32>
      %35 = vector.broadcast %34 : vector<1x128xf32> to vector<16x128xf32>
      %36 = arith.addf %33, %35 : vector<16x128xf32>
      %c0_24 = arith.constant 0 : index
      %c0_25 = arith.constant 0 : index
      %37 = vector.load %arg7[%c0_24, %c0_25] : memref<16x128xf32, #tpu.memory_space<vmem>>, vector<16x128xf32>
      tpu.vector_store %arg7[%c0_24, %c0_25], %36 {strides = array<i32>} : memref<16x128xf32, #tpu.memory_space<vmem>>, vector<16x128xf32>,
    } else {
    }
    return
  }
  func.func @transform_0(%arg0: i32, %arg1: i32) -> (i32, i32) {
    %c0_i32 = arith.constant 0 : i32
    %c0_i32_0 = arith.constant 0 : i32
    return %arg0, %c0_i32 : i32, i32
  }
  func.func @transform_1(%arg0: i32, %arg1: i32) -> (i32, i32) {
    %c0_i32 = arith.constant 0 : i32
    %c0_i32_0 = arith.constant 0 : i32
    return %c0_i32, %arg1 : i32, i32
  }
  func.func @transform_2(%arg0: i32, %arg1: i32) -> (i32, i32) {
    %c0_i32 = arith.constant 0 : i32
    %c0_i32_0 = arith.constant 0 : i32
    return %c0_i32, %arg1 : i32, i32
  }
  func.func @transform_3(%arg0: i32, %arg1: i32) -> (i32, i32) {
    %c0_i32 = arith.constant 0 : i32
    %c0_i32_0 = arith.constant 0 : i32
    return %arg1, %c0_i32 : i32, i32
  }
  func.func @transform_4(%arg0: i32, %arg1: i32) -> (i32, i32) {
    %c0_i32 = arith.constant 0 : i32
    %c0_i32_0 = arith.constant 0 : i32
    %c0_i32_1 = arith.constant 0 : i32
    return %c0_i32, %c0_i32_0 : i32, i32
  }
  func.func @transform_5(%arg0: i32, %arg1: i32) -> (i32, i32) {
    %c0_i32 = arith.constant 0 : i32
    %c0_i32_0 = arith.constant 0 : i32
    return %arg0, %c0_i32 : i32, i32
  }
}

module attributes {stable_mosaic.version = 11 : i64} {
  func.func @_ffn_kernel(%arg0: i32, %arg1: i32, %arg2: memref<16x128xf32, #tpu.memory_space<vmem>>, %arg3: memref<128x256xbf16, #tpu.memory_space<vmem>>, %arg4: memref<1x256xf32, #tpu.memory_space<vmem>>, %arg5: memref<256x128xbf16, #tpu.memory_space<vmem>>, %arg6: memref<1x128xf32, #tpu.memory_space<vmem>>, %arg7: memref<16x128xf32, #tpu.memory_space<vmem>>, %arg8: memref<16x128xf32, #tpu.memory_space<vmem>>) attributes {dimension_semantics = [#tpu.dimension_semantics<parallel>, #tpu.dimension_semantics<arbitrary>], iteration_bounds = array<i64: 1, 1>, scalar_prefetch = 0 : i64, scratch_operands = 1 : i64, tpu.core_type = #tpu.core_type<tc>, window_params = [{transform_indices = @transform_0, window_bounds = array<i64: 16, 128>}, {transform_indices = @transform_1, window_bounds = array<i64: 128, 256>}, {transform_indices = @transform_2, window_bounds = array<i64: 1, 256>}, {transform_indices = @transform_3, window_bounds = array<i64: 256, 128>}, {pipeline_mode = #tpu.pipeline_mode<synchronous>, transform_indices = @transform_4, window_bounds = array<i64: 1, 128>}, {transform_indices = @transform_5, window_bounds = array<i64: 16, 128>}]} {
    %c0_i32 = arith.constant 0 : i32
    %0 = arith.cmpi eq, %arg1, %c0_i32 : i32
    %1 = arith.extui %0 : i1 to i32
    %c0_i32_0 = arith.constant 0 : i32
    %2 = arith.cmpi ne, %1, %c0_i32_0 : i32
    scf.if %2 {
      %cst_20 = arith.constant 0.000000e+00 : f32
      %33 = vector.broadcast %cst_20 : f32 to vector<16x128xf32>
      %c0_21 = arith.constant 0 : index
      %c0_22 = arith.constant 0 : index
      %34 = vector.load %arg8[%c0_21, %c0_22] : memref<16x128xf32, #tpu.memory_space<vmem>>, vector<16x128xf32>
      tpu.vector_store %arg8[%c0_21, %c0_22], %33 {strides = array<i32>} : memref<16x128xf32, #tpu.memory_space<vmem>>, vector<16x128xf32>,
    } else {
    }
    %c0 = arith.constant 0 : index
    %c0_1 = arith.constant 0 : index
    %3 = vector.load %arg2[%c0, %c0_1] : memref<16x128xf32, #tpu.memory_space<vmem>>, vector<16x128xf32>
    %4 = arith.truncf %3 : vector<16x128xf32> to vector<16x128xbf16>
    %c0_2 = arith.constant 0 : index
    %c0_3 = arith.constant 0 : index
    %5 = vector.load %arg3[%c0_2, %c0_3] : memref<128x256xbf16, #tpu.memory_space<vmem>>, vector<128x256xbf16>
    %cst = arith.constant dense<0.000000e+00> : vector<16x256xf32>
    %6 = tpu.matmul %4, %5, %cst {dimension_numbers = #tpu.dot_dimension_numbers<[1], [0], [0], [1], [0, 0, 1, 1], [], []>} : vector<16x128xbf16>, vector<128x256xbf16>, vector<16x256xf32> -> vector<16x256xf32>
    %c0_4 = arith.constant 0 : index
    %c0_5 = arith.constant 0 : index
    %7 = vector.load %arg4[%c0_4, %c0_5] : memref<1x256xf32, #tpu.memory_space<vmem>>, vector<1x256xf32>
    %8 = vector.broadcast %7 : vector<1x256xf32> to vector<16x256xf32>
    %9 = arith.addf %6, %8 : vector<16x256xf32>
    %10 = arith.mulf %9, %9 : vector<16x256xf32>
    %cst_6 = arith.constant 5.000000e-01 : f32
    %11 = vector.broadcast %cst_6 : f32 to vector<16x256xf32>
    %12 = arith.mulf %11, %9 : vector<16x256xf32>
    %cst_7 = arith.constant 0.797884583 : f32
    %13 = vector.broadcast %cst_7 : f32 to vector<16x256xf32>
    %14 = arith.mulf %13, %9 : vector<16x256xf32>
    %cst_8 = arith.constant 4.471500e-02 : f32
    %15 = vector.broadcast %cst_8 : f32 to vector<16x256xf32>
    %16 = arith.mulf %15, %10 : vector<16x256xf32>
    %cst_9 = arith.constant 1.000000e+00 : f32
    %17 = vector.broadcast %cst_9 : f32 to vector<16x256xf32>
    %18 = arith.addf %17, %16 : vector<16x256xf32>
    %19 = arith.mulf %14, %18 : vector<16x256xf32>
    %20 = math.tanh %19 : vector<16x256xf32>
    %cst_10 = arith.constant 1.000000e+00 : f32
    %21 = vector.broadcast %cst_10 : f32 to vector<16x256xf32>
    %22 = arith.addf %21, %20 : vector<16x256xf32>
    %23 = arith.mulf %12, %22 : vector<16x256xf32>
    %c0_11 = arith.constant 0 : index
    %c0_12 = arith.constant 0 : index
    %24 = vector.load %arg8[%c0_11, %c0_12] : memref<16x128xf32, #tpu.memory_space<vmem>>, vector<16x128xf32>
    %25 = arith.truncf %23 : vector<16x256xf32> to vector<16x256xbf16>
    %c0_13 = arith.constant 0 : index
    %c0_14 = arith.constant 0 : index
    %26 = vector.load %arg5[%c0_13, %c0_14] : memref<256x128xbf16, #tpu.memory_space<vmem>>, vector<256x128xbf16>
    %cst_15 = arith.constant dense<0.000000e+00> : vector<16x128xf32>
    %27 = tpu.matmul %25, %26, %cst_15 {dimension_numbers = #tpu.dot_dimension_numbers<[1], [0], [0], [1], [0, 0, 1, 1], [], []>} : vector<16x256xbf16>, vector<256x128xbf16>, vector<16x128xf32> -> vector<16x128xf32>
    %28 = arith.addf %24, %27 : vector<16x128xf32>
    %c0_16 = arith.constant 0 : index
    %c0_17 = arith.constant 0 : index
    %29 = vector.load %arg8[%c0_16, %c0_17] : memref<16x128xf32, #tpu.memory_space<vmem>>, vector<16x128xf32>
    tpu.vector_store %arg8[%c0_16, %c0_17], %28 {strides = array<i32>} : memref<16x128xf32, #tpu.memory_space<vmem>>, vector<16x128xf32>,
    %c0_i32_18 = arith.constant 0 : i32
    %30 = arith.cmpi eq, %arg1, %c0_i32_18 : i32
    %31 = arith.extui %30 : i1 to i32
    %c0_i32_19 = arith.constant 0 : i32
    %32 = arith.cmpi ne, %31, %c0_i32_19 : i32
    scf.if %32 {
      %c0_20 = arith.constant 0 : index
      %c0_21 = arith.constant 0 : index
      %33 = vector.load %arg8[%c0_20, %c0_21] : memref<16x128xf32, #tpu.memory_space<vmem>>, vector<16x128xf32>
      %c0_22 = arith.constant 0 : index
      %c0_23 = arith.constant 0 : index
      %34 = vector.load %arg6[%c0_22, %c0_23] : memref<1x128xf32, #tpu.memory_space<vmem>>, vector<1x128xf32>
      %35 = vector.broadcast %34 : vector<1x128xf32> to vector<16x128xf32>
      %36 = arith.addf %33, %35 : vector<16x128xf32>
      %c0_24 = arith.constant 0 : index
      %c0_25 = arith.constant 0 : index
      %37 = vector.load %arg7[%c0_24, %c0_25] : memref<16x128xf32, #tpu.memory_space<vmem>>, vector<16x128xf32>
      tpu.vector_store %arg7[%c0_24, %c0_25], %36 {strides = array<i32>} : memref<16x128xf32, #tpu.memory_space<vmem>>, vector<16x128xf32>,
    } else {
    }
    return
  }
  func.func @transform_0(%arg0: i32, %arg1: i32) -> (i32, i32) {
    %c0_i32 = arith.constant 0 : i32
    %c0_i32_0 = arith.constant 0 : i32
    return %arg0, %c0_i32 : i32, i32
  }
  func.func @transform_1(%arg0: i32, %arg1: i32) -> (i32, i32) {
    %c0_i32 = arith.constant 0 : i32
    %c0_i32_0 = arith.constant 0 : i32
    return %c0_i32, %arg1 : i32, i32
  }
  func.func @transform_2(%arg0: i32, %arg1: i32) -> (i32, i32) {
    %c0_i32 = arith.constant 0 : i32
    %c0_i32_0 = arith.constant 0 : i32
    return %c0_i32, %arg1 : i32, i32
  }
  func.func @transform_3(%arg0: i32, %arg1: i32) -> (i32, i32) {
    %c0_i32 = arith.constant 0 : i32
    %c0_i32_0 = arith.constant 0 : i32
    return %arg1, %c0_i32 : i32, i32
  }
  func.func @transform_4(%arg0: i32, %arg1: i32) -> (i32, i32) {
    %c0_i32 = arith.constant 0 : i32
    %c0_i32_0 = arith.constant 0 : i32
    %c0_i32_1 = arith.constant 0 : i32
    return %c0_i32, %c0_i32_0 : i32, i32
  }
  func.func @transform_5(%arg0: i32, %arg1: i32) -> (i32, i32) {
    %c0_i32 = arith.constant 0 : i32
    %c0_i32_0 = arith.constant 0 : i32
    return %arg0, %c0_i32 : i32, i32
  }
}

</mosaic_0001>

<bundles_post_ra>
// kernel: tpu_custom_call.1
= control target key start
LH: loop header
LB: loop body
LE: loop exit
PB: predicated region body
PF: predicated region fallthrough
CT: control target
= control target key end

     0   :  { %10 = vsyncpa [#allocation4], 0  ;;  %s827_s0 = inlined_call_operand.hbm [shape: f32[16,128], index: 0, kind: input, shape index: {}]   ;;  %s828_s1 = inlined_call_operand.hbm [shape: bf16[128,256], index: 1, kind: input, shape index: {}]   ;;  %s829_s2 = inlined_call_operand.hbm [shape: f32[1,256], index: 2, kind: input, shape index: {}]   ;;  %s830_s3 = inlined_call_operand.hbm [shape: bf16[256,128], index: 3, kind: input, shape index: {}]   ;;  %s831_s4 = inlined_call_operand.vmem [shape: f32[1,128], index: 4, kind: input, shape index: {}]   ;;  %s832_s5 = inlined_call_operand.hbm [shape: f32[16,128], index: 5, kind: output, shape index: {}]  }
   0x1   :  { %11 = vsyncpa [#allocation7], 0 }
   0x2   :  { %12 = vsyncpa [#allocation10], 0 }
   0x3   :  { %13 = vsyncpa [#allocation5], 0  ;;  %s31_s20 = sshll.u32 %s828_s1, 4  ;;  %s761_s21 = smov [#allocation6]   ;;  %s32_s20 = int_to_ptr.hbm [resolvable:$true] %s31_s20 }
   0x4   :  { %s33_s22 = sshll.u32 %s761_s21, 4  ;;  %s18_s25 = sshll.u32 %s827_s0, 4  ;;  %s34_s22 = int_to_ptr.vmem [resolvable:$true] %s33_s22  ;;  %s19_s25 = int_to_ptr.hbm [resolvable:$true] %s18_s25 }
   0x5   :  { %s762_s26 = smov 128   ;;  %s763_s27 = smov 8  }
   0x6   :  { %39 = dma.hbm_to_vmem [thread:$0]  %s32_s20, 2048, %s34_s22, [#allocation7], %s762_s26, %s762_s26, %s763_s27  }
   0x7   :  { %s764_s28 = smov [#allocation3]   ;;  %s45_s1 = sshll.u32 %s829_s2, 4  ;;  %s46_s1 = int_to_ptr.hbm [resolvable:$true] %s45_s1 }
   0x8   :  { %s20_s29 = sshll.u32 %s764_s28, 4  ;;  %s55_s8 = sshll.u32 %s830_s3, 4  ;;  %s21_s29 = int_to_ptr.vmem [resolvable:$true] %s20_s29  ;;  %s56_s8 = int_to_ptr.hbm [resolvable:$true] %s55_s8 }
   0x9   :  { %26 = dma.hbm_to_vmem [thread:$0]  %s19_s25, 256, %s21_s29, [#allocation4], %s762_s26, %s762_s26, %s763_s27  }
   0xa   :  { %s765_s9 = smov [#allocation8]   ;;  %s766_s11 = smov [#allocation9]  }
   0xb   :  { %s47_s10 = sshll.u32 %s765_s9, 4  ;;  %s57_s12 = sshll.u32 %s766_s11, 4  ;;  %s48_s10 = int_to_ptr.vmem [resolvable:$true] %s47_s10  ;;  %s58_s12 = int_to_ptr.vmem [resolvable:$true] %s57_s12 }
   0xc   :  { %50 = dma.hbm_to_vmem [thread:$0]  %s46_s1, 32, %s48_s10, [#allocation7]  }
   0xd   :  { %s767_s13 = smov 64   ;;  %s768_s2 = smov 4  }
   0xe   :  { %63 = dma.hbm_to_vmem [thread:$0]  %s56_s8, 2048, %s58_s12, [#allocation10], %s767_s13, %s767_s13, %s768_s2  }
   0xf   :  { %753 = dma.done.wait [#allocation4], 256  }
  0x10   :  { %754 = vsyncadd [#allocation4], 4294967040 }
  0x11   :  { %755 = dma.done.wait [#allocation7], 2080  }
  0x12   :  { %756 = vsyncadd [#allocation7], 4294965216 }
  0x13   :  { %757 = dma.done.wait [#allocation10], 2048  }
  0x14   :  { %758 = vsyncadd [#allocation10], 4294965248  ;;  %v513_v0 = vld [vmem:[#allocation6 + $0x70] sm:$0xf]  ;;  %v598_v1 = vld [vmem:[#allocation6 + $0x74] sm:$0xf0] }
  0x15   :  { %v597_v2 = vld [vmem:[#allocation6 + $0x74] sm:$0xf]  ;;  %v514_v3 = vor.u32 %v598_v1, %v513_v0  ;;  %v515_v4 = vld [vmem:[#allocation6 + $0x78] sm:$0xf0]  ;;  %v505_v5 = vld [vmem:[#allocation6 + $0x60] sm:$0xf] }
  0x16   :  { %v596_v6 = vld [vmem:[#allocation6 + $0x64] sm:$0xf0]  ;;  %v518_v7 = vor.u32 %v597_v2, %v515_v4  ;;  %v595_v8 = vld [vmem:[#allocation6 + $0x64] sm:$0xf]  ;;  %v507_v9 = vld [vmem:[#allocation6 + $0x68] sm:$0xf0] }
  0x17   :  { %193 = vmatpush.bf16.msra.mxu0 %v514_v3  ;;  %v506_v10 = vor.u32 %v596_v6, %v505_v5  ;;  %v510_v11 = vor.u32 %v595_v8, %v507_v9  ;;  %v497_v12 = vld [vmem:[#allocation6 + $0x50] sm:$0xf]  ;;  %v594_v13 = vld [vmem:[#allocation6 + $0x54] sm:$0xf0]  ;;  %v593_v14 = vld [vmem:[#allocation6 + $0x54] sm:$0xf] }
  0x18   :  { %207 = vmatpush.bf16.msra.mxu1 %v518_v7  ;;  %v499_v15 = vld [vmem:[#allocation6 + $0x58] sm:$0xf0]  ;;  %v498_v16 = vor.u32 %v594_v13, %v497_v12  ;;  %v489_v18 = vld [vmem:[#allocation6 + $0x40] sm:$0xf]  ;;  %v592_v19 = vld [vmem:[#allocation6 + $0x44] sm:$0xf0] }
  0x19   :  { %v502_v17 = vor.u32 %v593_v14, %v499_v15  ;;  %v591_v20 = vld [vmem:[#allocation6 + $0x44] sm:$0xf]  ;;  %v491_v21 = vld [vmem:[#allocation6 + $0x48] sm:$0xf0]  ;;  %v490_v22 = vor.u32 %v592_v19, %v489_v18  ;;  %v481_v24 = vld [vmem:[#allocation6 + $0x30] sm:$0xf] }
  0x1a   :  { %v494_v23 = vor.u32 %v591_v20, %v491_v21  ;;  %v590_v25 = vld [vmem:[#allocation6 + $0x34] sm:$0xf0]  ;;  %v589_v26 = vld [vmem:[#allocation6 + $0x34] sm:$0xf]  ;;  %v483_v27 = vld [vmem:[#allocation6 + $0x38] sm:$0xf0] }
  0x1b   :  { %194 = vmatpush.bf16.msra.mxu0 %v506_v10  ;;  %v482_v28 = vor.u32 %v590_v25, %v481_v24  ;;  %v486_v29 = vor.u32 %v589_v26, %v483_v27  ;;  %v473_v30 = vld [vmem:[#allocation6 + $0x20] sm:$0xf]  ;;  %v588_v31 = vld [vmem:[#allocation6 + $0x24] sm:$0xf0]  ;;  %v587_v32 = vld [vmem:[#allocation6 + $0x24] sm:$0xf] }
  0x1c   :  { %208 = vmatpush.bf16.msra.mxu1 %v510_v11  ;;  %v475_v33 = vld [vmem:[#allocation6 + $0x28] sm:$0xf0]  ;;  %v474_v34 = vor.u32 %v588_v31, %v473_v30  ;;  %v465_v36 = vld [vmem:[#allocation6 + $0x10] sm:$0xf]  ;;  %v586_v37 = vld [vmem:[#allocation6 + $0x14] sm:$0xf0] }
  0x1d   :  { %v478_v35 = vor.u32 %v587_v32, %v475_v33  ;;  %v585_v38 = vld [vmem:[#allocation6 + $0x14] sm:$0xf]  ;;  %v467_v39 = vld [vmem:[#allocation6 + $0x18] sm:$0xf0]  ;;  %v466_v40 = vor.u32 %v586_v37, %v465_v36  ;;  %v457_v42 = vld [vmem:[#allocation6] sm:$0xf] }
  0x1e   :  { %v470_v41 = vor.u32 %v585_v38, %v467_v39  ;;  %v584_v43 = vld [vmem:[#allocation6 + $0x4] sm:$0xf0]  ;;  %v583_v44 = vld [vmem:[#allocation6 + $0x4] sm:$0xf]  ;;  %v459_v45 = vld [vmem:[#allocation6 + $0x8] sm:$0xf0] }
  0x1f   :  { %195 = vmatpush.bf16.msra.mxu0 %v498_v16  ;;  %v458_v46 = vor.u32 %v584_v43, %v457_v42  ;;  %v88_v47 = vld [vmem:[#allocation3] sm:$0xff]  ;;  %v89_v48 = vld [vmem:[#allocation3 + $0x8] sm:$0xff]  ;;  %v462_v49 = vor.u32 %v583_v44, %v459_v45  ;;  %v603_v57 = vld [vmem:[#allocation9 + $0x20] sm:$0xff]  ;;  %s769_s15 = smov [#allocation11]   ;;  %s440_s19 = sshll.u32 %s832_s5, 4  ;;  %s441_s19 = int_to_ptr.hbm [resolvable:$true] %s440_s19 }
  0x20   :  { %209 = vmatpush.bf16.msra.mxu1 %v502_v17  ;;  %v90_v50 = vpack.c.bf16 %v89_v48, %v88_v47  ;;  %v606_v51 = vld [vmem:[#allocation9 + $0x38] sm:$0xff]  ;;  %v605_v53 = vld [vmem:[#allocation9 + $0x30] sm:$0xff]  ;;  %v604_v55 = vld [vmem:[#allocation9 + $0x28] sm:$0xff]  ;;  %s438_s16 = sshll.u32 %s769_s15, 4  ;;  %s439_s16 = int_to_ptr.vmem [resolvable:$true] %s438_s16 }
  0x21   :  { %v614_v52 = vld [vmem:[#allocation9 + $0x78] sm:$0xff]  ;;  %389 = vmatpush.bf16.msra.mxu2 %v606_v51  ;;  %v613_v54 = vld [vmem:[#allocation9 + $0x70] sm:$0xff]  ;;  %v612_v56 = vld [vmem:[#allocation9 + $0x68] sm:$0xff] }
  0x22   :  { %403 = vmatpush.bf16.msra.mxu3 %v614_v52  ;;  %v611_v58 = vld [vmem:[#allocation9 + $0x60] sm:$0xff]  ;;  %v602_v59 = vld [vmem:[#allocation9 + $0x18] sm:$0xff]  ;;  %v601_v61 = vld [vmem:[#allocation9 + $0x10] sm:$0xff] }
  0x23   :  { %196 = vmatpush.bf16.msra.mxu0 %v490_v22  ;;  %v610_v60 = vld [vmem:[#allocation9 + $0x58] sm:$0xff]  ;;  %v609_v62 = vld [vmem:[#allocation9 + $0x50] sm:$0xff]  ;;  %v600_v63 = vld [vmem:[#allocation9 + $0x8] sm:$0xff] }
  0x24   :  { %210 = vmatpush.bf16.msra.mxu1 %v494_v23  ;;  %v608_v0 = vld [vmem:[#allocation9 + $0x48] sm:$0xff]  ;;  %v107_v1 = vld [vmem:[#allocation8] sm:$0x3]  ;;  %v599_v2 = vld [vmem:[#allocation9] sm:$0xff] }
  0x25   :  { %390 = vmatpush.bf16.msra.mxu2 %v605_v53  ;;  %v607_v3 = vld [vmem:[#allocation9 + $0x40] sm:$0xff]  ;;  %v109_v4 = vperm.slane %v107_v1, 0  ;;  %v110_v5 = vperm.slane %v107_v1, 1  ;;  %v624_v53 = vld [vmem:[%s831_s4] ss:$0 sm:$0xff] }
  0x26   :  { %404 = vmatpush.bf16.msra.mxu3 %v613_v54 }
  0x27   :  { %197 = vmatpush.bf16.msra.mxu0 %v482_v28 }
  0x28   :  { %211 = vmatpush.bf16.msra.mxu1 %v486_v29 }
  0x29   :  { %391 = vmatpush.bf16.msra.mxu2 %v604_v55 }
  0x2a   :  { %405 = vmatpush.bf16.msra.mxu3 %v612_v56 }
  0x2b   :  { %198 = vmatpush.bf16.msra.mxu0 %v474_v34 }
  0x2c   :  { %212 = vmatpush.bf16.msra.mxu1 %v478_v35 }
  0x2d   :  { %392 = vmatpush.bf16.msra.mxu2 %v603_v57 }
  0x2e   :  { %406 = vmatpush.bf16.msra.mxu3 %v611_v58 }
  0x2f   :  { %199 = vmatpush.bf16.msra.mxu0 %v466_v40 }
  0x30   :  { %213 = vmatpush.bf16.msra.mxu1 %v470_v41 }
  0x31   :  { %393 = vmatpush.bf16.msra.mxu2 %v602_v59 }
  0x32   :  { %407 = vmatpush.bf16.msra.mxu3 %v610_v60 }
  0x33   :  { %200 = vmatpush.bf16.msra.mxu0 %v458_v46 }
  0x34   :  { %214 = vmatpush.bf16.msra.mxu1 %v462_v49 }
  0x35   :  { %394 = vmatpush.bf16.msra.mxu2 %v601_v61 }
  0x36   :  { %201 = vmatmul.bf16.vlgmr.msra.gmra.mxu0 %v90_v50  ;;  %408 = vmatpush.bf16.msra.mxu3 %v609_v62 }
  0x37   :  { %215 = vmatmul.bf16.vlgmr.msra.gmra.mxu1 %v90_v50 }
  0x39   :  { %395 = vmatpush.bf16.msra.mxu2 %v600_v63 }
  0x3a   :  { %409 = vmatpush.bf16.msra.mxu3 %v608_v0 }
  0x3d   :  { %396 = vmatpush.bf16.msra.mxu2 %v599_v2 }
  0x3e   :  { %410 = vmatpush.bf16.msra.mxu3 %v607_v3 }
  0xb3   :  { %v202_v6 = vpop.f32.mrf.mxu0 }
  0xb4   :  { %v203_v7 = vadd.f32 %v202_v6, %v109_v4  ;;  %v216_v8 = vpop.f32.mrf.mxu1 }
  0xb5   :  { %v217_v9 = vadd.f32 %v216_v8, %v110_v5 }
  0xb6   :  { %v221_v10 = vmul.f32 %v203_v7, %v203_v7  ;;  %v229_v17 = vmul.f32 0.7978846, %v203_v7  ;;  %v225_v40 = vmul.f32 0.5, %v203_v7 }
  0xb7   :  { %v222_v11 = vmul.f32 %v217_v9, %v217_v9  ;;  %v230_v20 = vmul.f32 0.7978846, %v217_v9  ;;  %v226_v43 = vmul.f32 0.5, %v217_v9 }
  0xb8   :  { %v233_v12 = vmul.f32 0.044715, %v221_v10 }
  0xb9   :  { %v234_v13 = vmul.f32 0.044715, %v222_v11 }
  0xba   :  { %v237_v14 = vadd.f32 1.0, %v233_v12 }
  0xbb   :  { %v238_v15 = vadd.f32 1.0, %v234_v13  ;;  %v204_v16 = vpop.f32.mrf.mxu0 }
  0xbc   :  { %v205_v18 = vadd.f32 %v204_v16, %v109_v4  ;;  %v218_v19 = vpop.f32.mrf.mxu1  ;;  %v241_v22 = vmul.f32 %v237_v14, %v229_v17 }
  0xbd   :  { %v219_v21 = vadd.f32 %v218_v19, %v110_v5  ;;  %v242_v24 = vmul.f32 %v238_v15, %v230_v20 }
  0xbe   :  { %v223_v23 = vmul.f32 %v205_v18, %v205_v18  ;;  %v231_v28 = vmul.f32 0.7978846, %v205_v18  ;;  %625 = vtanh.f32 %v241_v22  ;;  %v227_v41 = vmul.f32 0.5, %v205_v18 }
  0xbf   :  { %v224_v25 = vmul.f32 %v219_v21, %v219_v21  ;;  %v232_v30 = vmul.f32 0.7978846, %v219_v21  ;;  %627 = vtanh.f32 %v242_v24  ;;  %v228_v44 = vmul.f32 0.5, %v219_v21 }
  0xc0   :  { %v235_v26 = vmul.f32 0.044715, %v223_v23 }
  0xc1   :  { %v236_v27 = vmul.f32 0.044715, %v224_v25 }
  0xc2   :  { %v239_v29 = vadd.f32 1.0, %v235_v26 }
  0xc3   :  { %v240_v31 = vadd.f32 1.0, %v236_v27 }
  0xc4   :  { %v243_v32 = vmul.f32 %v239_v29, %v231_v28  ;;  %v626_v34 = vpop.eup %625 }
  0xc5   :  { %v244_v33 = vmul.f32 %v240_v31, %v232_v30  ;;  %v628_v35 = vpop.eup %627  ;;  %v249_v36 = vadd.f32 1.0, %v626_v34 }
  0xc6   :  { %629 = vtanh.f32 %v243_v32  ;;  %v250_v38 = vadd.f32 1.0, %v628_v35 }
  0xc7   :  { %631 = vtanh.f32 %v244_v33  ;;  %v253_v46 = vmul.f32 %v249_v36, %v225_v40 }
  0xc8   :  { %v254_v48 = vmul.f32 %v250_v38, %v226_v43 }
  0xcc   :  { %v630_v37 = vpop.eup %629 }
  0xcd   :  { %v632_v39 = vpop.eup %631  ;;  %v251_v42 = vadd.f32 1.0, %v630_v37 }
  0xce   :  { %v252_v45 = vadd.f32 1.0, %v632_v39 }
  0xcf   :  { %v255_v47 = vmul.f32 %v251_v42, %v227_v41 }
  0xd0   :  { %v256_v49 = vmul.f32 %v252_v45, %v228_v44 }
  0xd1   :  { %v259_v50 = vpack.c.bf16 %v255_v47, %v253_v46 }
  0xd2   :  { %v260_v51 = vpack.c.bf16 %v256_v49, %v254_v48 }
  0xd3   :  { %397 = vmatmul.bf16.vlgmr.msra.gmra.mxu2 %v259_v50 }
  0xd4   :  { %411 = vmatmul.bf16.vlgmr.msra.gmra.mxu3 %v260_v51 }
 0x156   :  { %v398_v52 = vpop.f32.mrf.mxu2 }
 0x157   :  { %v412_v54 = vpop.f32.mrf.mxu3 }
 0x158   :  { %v413_v55 = vadd.f32 %v412_v54, %v398_v52 }
 0x15a   :  { %v430_v56 = vadd.f32 %v624_v53, %v413_v55 }
 0x15c   :  { %432 = vst [vmem:[#allocation11] sm:$0xff] %v430_v56 }
 0x15e   :  { %v400_v57 = vpop.f32.mrf.mxu2 }
 0x15f   :  { %v414_v58 = vpop.f32.mrf.mxu3 }
 0x160   :  { %v415_v59 = vadd.f32 %v414_v58, %v400_v57 }
 0x162   :  { %v431_v60 = vadd.f32 %v624_v53, %v415_v59 }
 0x164   :  { %433 = vst [vmem:[#allocation11 + $0x8] sm:$0xff] %v431_v60 }
 0x165   :  { %446 = dma.vmem_to_hbm [thread:$0]  %s439_s16, 256, %s441_s19, [#allocation5], %s762_s26, %s762_s26, %s763_s27  }
 0x166   :  { %759 = dma.done.wait [#allocation5], 256  }
 0x167   :  { %760 = vsyncadd [#allocation5], 4294967040 }
 0x168   :  { %451 = vsyncpa [#allocation4], 1 }
 0x169   :  { %452 = vsyncpa [#allocation7], 1 }
 0x16a   :  { %453 = vsyncpa [#allocation10], 1 }
 0x16b   :  { %454 = vsyncpa [#allocation5], 1 }

// kernel: tpu_custom_call.1
= control target key start
LH: loop header
LB: loop body
LE: loop exit
PB: predicated region body
PF: predicated region fallthrough
CT: control target
= control target key end

     0   :  { %10 = vsyncpa [#allocation4], 0  ;;  %s827_s0 = inlined_call_operand.hbm [shape: f32[16,128], index: 0, kind: input, shape index: {}]   ;;  %s828_s1 = inlined_call_operand.hbm [shape: bf16[128,256], index: 1, kind: input, shape index: {}]   ;;  %s829_s2 = inlined_call_operand.hbm [shape: f32[1,256], index: 2, kind: input, shape index: {}]   ;;  %s830_s3 = inlined_call_operand.hbm [shape: bf16[256,128], index: 3, kind: input, shape index: {}]   ;;  %s831_s4 = inlined_call_operand.vmem [shape: f32[1,128], index: 4, kind: input, shape index: {}]   ;;  %s832_s5 = inlined_call_operand.hbm [shape: f32[16,128], index: 5, kind: output, shape index: {}]  }
   0x1   :  { %11 = vsyncpa [#allocation7], 0 }
   0x2   :  { %12 = vsyncpa [#allocation10], 0 }
   0x3   :  { %13 = vsyncpa [#allocation5], 0  ;;  %s31_s20 = sshll.u32 %s828_s1, 4  ;;  %s761_s21 = smov [#allocation6]   ;;  %s32_s20 = int_to_ptr.hbm [resolvable:$true] %s31_s20 }
   0x4   :  { %s33_s22 = sshll.u32 %s761_s21, 4  ;;  %s18_s25 = sshll.u32 %s827_s0, 4  ;;  %s34_s22 = int_to_ptr.vmem [resolvable:$true] %s33_s22  ;;  %s19_s25 = int_to_ptr.hbm [resolvable:$true] %s18_s25 }
   0x5   :  { %s762_s26 = smov 128   ;;  %s763_s27 = smov 8  }
   0x6   :  { %39 = dma.hbm_to_vmem [thread:$0]  %s32_s20, 2048, %s34_s22, [#allocation7], %s762_s26, %s762_s26, %s763_s27  }
   0x7   :  { %s764_s28 = smov [#allocation3]   ;;  %s45_s1 = sshll.u32 %s829_s2, 4  ;;  %s46_s1 = int_to_ptr.hbm [resolvable:$true] %s45_s1 }
   0x8   :  { %s20_s29 = sshll.u32 %s764_s28, 4  ;;  %s55_s8 = sshll.u32 %s830_s3, 4  ;;  %s21_s29 = int_to_ptr.vmem [resolvable:$true] %s20_s29  ;;  %s56_s8 = int_to_ptr.hbm [resolvable:$true] %s55_s8 }
   0x9   :  { %26 = dma.hbm_to_vmem [thread:$0]  %s19_s25, 256, %s21_s29, [#allocation4], %s762_s26, %s762_s26, %s763_s27  }
   0xa   :  { %s765_s9 = smov [#allocation8]   ;;  %s766_s11 = smov [#allocation9]  }
   0xb   :  { %s47_s10 = sshll.u32 %s765_s9, 4  ;;  %s57_s12 = sshll.u32 %s766_s11, 4  ;;  %s48_s10 = int_to_ptr.vmem [resolvable:$true] %s47_s10  ;;  %s58_s12 = int_to_ptr.vmem [resolvable:$true] %s57_s12 }
   0xc   :  { %50 = dma.hbm_to_vmem [thread:$0]  %s46_s1, 32, %s48_s10, [#allocation7]  }
   0xd   :  { %s767_s13 = smov 64   ;;  %s768_s2 = smov 4  }
   0xe   :  { %63 = dma.hbm_to_vmem [thread:$0]  %s56_s8, 2048, %s58_s12, [#allocation10], %s767_s13, %s767_s13, %s768_s2  }
   0xf   :  { %753 = dma.done.wait [#allocation4], 256  }
  0x10   :  { %754 = vsyncadd [#allocation4], 4294967040 }
  0x11   :  { %755 = dma.done.wait [#allocation7], 2080  }
  0x12   :  { %756 = vsyncadd [#allocation7], 4294965216 }
  0x13   :  { %757 = dma.done.wait [#allocation10], 2048  }
  0x14   :  { %758 = vsyncadd [#allocation10], 4294965248  ;;  %v513_v0 = vld [vmem:[#allocation6 + $0x70] sm:$0xf]  ;;  %v598_v1 = vld [vmem:[#allocation6 + $0x74] sm:$0xf0] }
  0x15   :  { %v597_v2 = vld [vmem:[#allocation6 + $0x74] sm:$0xf]  ;;  %v514_v3 = vor.u32 %v598_v1, %v513_v0  ;;  %v515_v4 = vld [vmem:[#allocation6 + $0x78] sm:$0xf0]  ;;  %v505_v5 = vld [vmem:[#allocation6 + $0x60] sm:$0xf] }
  0x16   :  { %v596_v6 = vld [vmem:[#allocation6 + $0x64] sm:$0xf0]  ;;  %v518_v7 = vor.u32 %v597_v2, %v515_v4  ;;  %v595_v8 = vld [vmem:[#allocation6 + $0x64] sm:$0xf]  ;;  %v507_v9 = vld [vmem:[#allocation6 + $0x68] sm:$0xf0] }
  0x17   :  { %193 = vmatpush.bf16.msra.mxu0 %v514_v3  ;;  %v506_v10 = vor.u32 %v596_v6, %v505_v5  ;;  %v510_v11 = vor.u32 %v595_v8, %v507_v9  ;;  %v497_v12 = vld [vmem:[#allocation6 + $0x50] sm:$0xf]  ;;  %v594_v13 = vld [vmem:[#allocation6 + $0x54] sm:$0xf0]  ;;  %v593_v14 = vld [vmem:[#allocation6 + $0x54] sm:$0xf] }
  0x18   :  { %207 = vmatpush.bf16.msra.mxu1 %v518_v7  ;;  %v499_v15 = vld [vmem:[#allocation6 + $0x58] sm:$0xf0]  ;;  %v498_v16 = vor.u32 %v594_v13, %v497_v12  ;;  %v489_v18 = vld [vmem:[#allocation6 + $0x40] sm:$0xf]  ;;  %v592_v19 = vld [vmem:[#allocation6 + $0x44] sm:$0xf0] }
  0x19   :  { %v502_v17 = vor.u32 %v593_v14, %v499_v15  ;;  %v591_v20 = vld [vmem:[#allocation6 + $0x44] sm:$0xf]  ;;  %v491_v21 = vld [vmem:[#allocation6 + $0x48] sm:$0xf0]  ;;  %v490_v22 = vor.u32 %v592_v19, %v489_v18  ;;  %v481_v24 = vld [vmem:[#allocation6 + $0x30] sm:$0xf] }
  0x1a   :  { %v494_v23 = vor.u32 %v591_v20, %v491_v21  ;;  %v590_v25 = vld [vmem:[#allocation6 + $0x34] sm:$0xf0]  ;;  %v589_v26 = vld [vmem:[#allocation6 + $0x34] sm:$0xf]  ;;  %v483_v27 = vld [vmem:[#allocation6 + $0x38] sm:$0xf0] }
  0x1b   :  { %194 = vmatpush.bf16.msra.mxu0 %v506_v10  ;;  %v482_v28 = vor.u32 %v590_v25, %v481_v24  ;;  %v486_v29 = vor.u32 %v589_v26, %v483_v27  ;;  %v473_v30 = vld [vmem:[#allocation6 + $0x20] sm:$0xf]  ;;  %v588_v31 = vld [vmem:[#allocation6 + $0x24] sm:$0xf0]  ;;  %v587_v32 = vld [vmem:[#allocation6 + $0x24] sm:$0xf] }
  0x1c   :  { %208 = vmatpush.bf16.msra.mxu1 %v510_v11  ;;  %v475_v33 = vld [vmem:[#allocation6 + $0x28] sm:$0xf0]  ;;  %v474_v34 = vor.u32 %v588_v31, %v473_v30  ;;  %v465_v36 = vld [vmem:[#allocation6 + $0x10] sm:$0xf]  ;;  %v586_v37 = vld [vmem:[#allocation6 + $0x14] sm:$0xf0] }
  0x1d   :  { %v478_v35 = vor.u32 %v587_v32, %v475_v33  ;;  %v585_v38 = vld [vmem:[#allocation6 + $0x14] sm:$0xf]  ;;  %v467_v39 = vld [vmem:[#allocation6 + $0x18] sm:$0xf0]  ;;  %v466_v40 = vor.u32 %v586_v37, %v465_v36  ;;  %v457_v42 = vld [vmem:[#allocation6] sm:$0xf] }
  0x1e   :  { %v470_v41 = vor.u32 %v585_v38, %v467_v39  ;;  %v584_v43 = vld [vmem:[#allocation6 + $0x4] sm:$0xf0]  ;;  %v583_v44 = vld [vmem:[#allocation6 + $0x4] sm:$0xf]  ;;  %v459_v45 = vld [vmem:[#allocation6 + $0x8] sm:$0xf0] }
  0x1f   :  { %195 = vmatpush.bf16.msra.mxu0 %v498_v16  ;;  %v458_v46 = vor.u32 %v584_v43, %v457_v42  ;;  %v88_v47 = vld [vmem:[#allocation3] sm:$0xff]  ;;  %v89_v48 = vld [vmem:[#allocation3 + $0x8] sm:$0xff]  ;;  %v462_v49 = vor.u32 %v583_v44, %v459_v45  ;;  %v603_v57 = vld [vmem:[#allocation9 + $0x20] sm:$0xff]  ;;  %s769_s15 = smov [#allocation11]   ;;  %s440_s19 = sshll.u32 %s832_s5, 4  ;;  %s441_s19 = int_to_ptr.hbm [resolvable:$true] %s440_s19 }
  0x20   :  { %209 = vmatpush.bf16.msra.mxu1 %v502_v17  ;;  %v90_v50 = vpack.c.bf16 %v89_v48, %v88_v47  ;;  %v606_v51 = vld [vmem:[#allocation9 + $0x38] sm:$0xff]  ;;  %v605_v53 = vld [vmem:[#allocation9 + $0x30] sm:$0xff]  ;;  %v604_v55 = vld [vmem:[#allocation9 + $0x28] sm:$0xff]  ;;  %s438_s16 = sshll.u32 %s769_s15, 4  ;;  %s439_s16 = int_to_ptr.vmem [resolvable:$true] %s438_s16 }
  0x21   :  { %v614_v52 = vld [vmem:[#allocation9 + $0x78] sm:$0xff]  ;;  %389 = vmatpush.bf16.msra.mxu2 %v606_v51  ;;  %v613_v54 = vld [vmem:[#allocation9 + $0x70] sm:$0xff]  ;;  %v612_v56 = vld [vmem:[#allocation9 + $0x68] sm:$0xff] }
  0x22   :  { %403 = vmatpush.bf16.msra.mxu3 %v614_v52  ;;  %v611_v58 = vld [vmem:[#allocation9 + $0x60] sm:$0xff]  ;;  %v602_v59 = vld [vmem:[#allocation9 + $0x18] sm:$0xff]  ;;  %v601_v61 = vld [vmem:[#allocation9 + $0x10] sm:$0xff] }
  0x23   :  { %196 = vmatpush.bf16.msra.mxu0 %v490_v22  ;;  %v610_v60 = vld [vmem:[#allocation9 + $0x58] sm:$0xff]  ;;  %v609_v62 = vld [vmem:[#allocation9 + $0x50] sm:$0xff]  ;;  %v600_v63 = vld [vmem:[#allocation9 + $0x8] sm:$0xff] }
  0x24   :  { %210 = vmatpush.bf16.msra.mxu1 %v494_v23  ;;  %v608_v0 = vld [vmem:[#allocation9 + $0x48] sm:$0xff]  ;;  %v107_v1 = vld [vmem:[#allocation8] sm:$0x3]  ;;  %v599_v2 = vld [vmem:[#allocation9] sm:$0xff] }
  0x25   :  { %390 = vmatpush.bf16.msra.mxu2 %v605_v53  ;;  %v607_v3 = vld [vmem:[#allocation9 + $0x40] sm:$0xff]  ;;  %v109_v4 = vperm.slane %v107_v1, 0  ;;  %v110_v5 = vperm.slane %v107_v1, 1  ;;  %v624_v53 = vld [vmem:[%s831_s4] ss:$0 sm:$0xff] }
  0x26   :  { %404 = vmatpush.bf16.msra.mxu3 %v613_v54 }
  0x27   :  { %197 = vmatpush.bf16.msra.mxu0 %v482_v28 }
  0x28   :  { %211 = vmatpush.bf16.msra.mxu1 %v486_v29 }
  0x29   :  { %391 = vmatpush.bf16.msra.mxu2 %v604_v55 }
  0x2a   :  { %405 = vmatpush.bf16.msra.mxu3 %v612_v56 }
  0x2b   :  { %198 = vmatpush.bf16.msra.mxu0 %v474_v34 }
  0x2c   :  { %212 = vmatpush.bf16.msra.mxu1 %v478_v35 }
  0x2d   :  { %392 = vmatpush.bf16.msra.mxu2 %v603_v57 }
  0x2e   :  { %406 = vmatpush.bf16.msra.mxu3 %v611_v58 }
  0x2f   :  { %199 = vmatpush.bf16.msra.mxu0 %v466_v40 }
  0x30   :  { %213 = vmatpush.bf16.msra.mxu1 %v470_v41 }
  0x31   :  { %393 = vmatpush.bf16.msra.mxu2 %v602_v59 }
  0x32   :  { %407 = vmatpush.bf16.msra.mxu3 %v610_v60 }
  0x33   :  { %200 = vmatpush.bf16.msra.mxu0 %v458_v46 }
  0x34   :  { %214 = vmatpush.bf16.msra.mxu1 %v462_v49 }
  0x35   :  { %394 = vmatpush.bf16.msra.mxu2 %v601_v61 }
  0x36   :  { %201 = vmatmul.bf16.vlgmr.msra.gmra.mxu0 %v90_v50  ;;  %408 = vmatpush.bf16.msra.mxu3 %v609_v62 }
  0x37   :  { %215 = vmatmul.bf16.vlgmr.msra.gmra.mxu1 %v90_v50 }
  0x39   :  { %395 = vmatpush.bf16.msra.mxu2 %v600_v63 }
  0x3a   :  { %409 = vmatpush.bf16.msra.mxu3 %v608_v0 }
  0x3d   :  { %396 = vmatpush.bf16.msra.mxu2 %v599_v2 }
  0x3e   :  { %410 = vmatpush.bf16.msra.mxu3 %v607_v3 }
  0xb3   :  { %v202_v6 = vpop.f32.mrf.mxu0 }
  0xb4   :  { %v203_v7 = vadd.f32 %v202_v6, %v109_v4  ;;  %v216_v8 = vpop.f32.mrf.mxu1 }
  0xb5   :  { %v217_v9 = vadd.f32 %v216_v8, %v110_v5 }
  0xb6   :  { %v221_v10 = vmul.f32 %v203_v7, %v203_v7  ;;  %v229_v17 = vmul.f32 0.7978846, %v203_v7  ;;  %v225_v40 = vmul.f32 0.5, %v203_v7 }
  0xb7   :  { %v222_v11 = vmul.f32 %v217_v9, %v217_v9  ;;  %v230_v20 = vmul.f32 0.7978846, %v217_v9  ;;  %v226_v43 = vmul.f32 0.5, %v217_v9 }
  0xb8   :  { %v233_v12 = vmul.f32 0.044715, %v221_v10 }
  0xb9   :  { %v234_v13 = vmul.f32 0.044715, %v222_v11 }
  0xba   :  { %v237_v14 = vadd.f32 1.0, %v233_v12 }
  0xbb   :  { %v238_v15 = vadd.f32 1.0, %v234_v13  ;;  %v204_v16 = vpop.f32.mrf.mxu0 }
  0xbc   :  { %v205_v18 = vadd.f32 %v204_v16, %v109_v4  ;;  %v218_v19 = vpop.f32.mrf.mxu1  ;;  %v241_v22 = vmul.f32 %v237_v14, %v229_v17 }
  0xbd   :  { %v219_v21 = vadd.f32 %v218_v19, %v110_v5  ;;  %v242_v24 = vmul.f32 %v238_v15, %v230_v20 }
  0xbe   :  { %v223_v23 = vmul.f32 %v205_v18, %v205_v18  ;;  %v231_v28 = vmul.f32 0.7978846, %v205_v18  ;;  %625 = vtanh.f32 %v241_v22  ;;  %v227_v41 = vmul.f32 0.5, %v205_v18 }
  0xbf   :  { %v224_v25 = vmul.f32 %v219_v21, %v219_v21  ;;  %v232_v30 = vmul.f32 0.7978846, %v219_v21  ;;  %627 = vtanh.f32 %v242_v24  ;;  %v228_v44 = vmul.f32 0.5, %v219_v21 }
  0xc0   :  { %v235_v26 = vmul.f32 0.044715, %v223_v23 }
  0xc1   :  { %v236_v27 = vmul.f32 0.044715, %v224_v25 }
  0xc2   :  { %v239_v29 = vadd.f32 1.0, %v235_v26 }
  0xc3   :  { %v240_v31 = vadd.f32 1.0, %v236_v27 }
  0xc4   :  { %v243_v32 = vmul.f32 %v239_v29, %v231_v28  ;;  %v626_v34 = vpop.eup %625 }
  0xc5   :  { %v244_v33 = vmul.f32 %v240_v31, %v232_v30  ;;  %v628_v35 = vpop.eup %627  ;;  %v249_v36 = vadd.f32 1.0, %v626_v34 }
  0xc6   :  { %629 = vtanh.f32 %v243_v32  ;;  %v250_v38 = vadd.f32 1.0, %v628_v35 }
  0xc7   :  { %631 = vtanh.f32 %v244_v33  ;;  %v253_v46 = vmul.f32 %v249_v36, %v225_v40 }
  0xc8   :  { %v254_v48 = vmul.f32 %v250_v38, %v226_v43 }
  0xcc   :  { %v630_v37 = vpop.eup %629 }
  0xcd   :  { %v632_v39 = vpop.eup %631  ;;  %v251_v42 = vadd.f32 1.0, %v630_v37 }
  0xce   :  { %v252_v45 = vadd.f32 1.0, %v632_v39 }
  0xcf   :  { %v255_v47 = vmul.f32 %v251_v42, %v227_v41 }
  0xd0   :  { %v256_v49 = vmul.f32 %v252_v45, %v228_v44 }
  0xd1   :  { %v259_v50 = vpack.c.bf16 %v255_v47, %v253_v46 }
  0xd2   :  { %v260_v51 = vpack.c.bf16 %v256_v49, %v254_v48 }
  0xd3   :  { %397 = vmatmul.bf16.vlgmr.msra.gmra.mxu2 %v259_v50 }
  0xd4   :  { %411 = vmatmul.bf16.vlgmr.msra.gmra.mxu3 %v260_v51 }
 0x156   :  { %v398_v52 = vpop.f32.mrf.mxu2 }
 0x157   :  { %v412_v54 = vpop.f32.mrf.mxu3 }
 0x158   :  { %v413_v55 = vadd.f32 %v412_v54, %v398_v52 }
 0x15a   :  { %v430_v56 = vadd.f32 %v624_v53, %v413_v55 }
 0x15c   :  { %432 = vst [vmem:[#allocation11] sm:$0xff] %v430_v56 }
 0x15e   :  { %v400_v57 = vpop.f32.mrf.mxu2 }
 0x15f   :  { %v414_v58 = vpop.f32.mrf.mxu3 }
 0x160   :  { %v415_v59 = vadd.f32 %v414_v58, %v400_v57 }
 0x162   :  { %v431_v60 = vadd.f32 %v624_v53, %v415_v59 }
 0x164   :  { %433 = vst [vmem:[#allocation11 + $0x8] sm:$0xff] %v431_v60 }
 0x165   :  { %446 = dma.vmem_to_hbm [thread:$0]  %s439_s16, 256, %s441_s19, [#allocation5], %s762_s26, %s762_s26, %s763_s27  }
 0x166   :  { %759 = dma.done.wait [#allocation5], 256  }
 0x167   :  { %760 = vsyncadd [#allocation5], 4294967040 }
 0x168   :  { %451 = vsyncpa [#allocation4], 1 }
 0x169   :  { %452 = vsyncpa [#allocation7], 1 }
 0x16a   :  { %453 = vsyncpa [#allocation10], 1 }
 0x16b   :  { %454 = vsyncpa [#allocation5], 1 }

</bundles_post_ra>
